<compile_context>
chip_gen: v6e
topology: v6e:2x2x1
jax: 0.10.0
libtpu: 0.0.40
codegen_flags: <defaults>
</compile_context>

<pallas_src>
import jax
import jax.numpy as jnp
from jax.experimental import pallas as pl
from jax.experimental.pallas import tpu as pltpu


# ---------------------------------------------------------------------------
# Kernels
# ---------------------------------------------------------------------------

def _hidden_stream_kernel(x_ref, w1_ref, b1_ref, w2_ref, o_ref, acc_ref):
    """Grid = (n_tiles, hidden_splits, k_tiles); k (reduction) is last.

    x_ref   : (TN, TK)   current x chunk (streamed, f32 or bf16)
    w1_ref  : (TK, TH)   current W1 chunk (streamed, double-buffered)
    b1_ref  : (1, TH)    resident across the K loop (f32)
    w2_ref  : (1, TH)    resident W2 row chunk (f32)
    o_ref   : (TN, 1)    per-(n,h)-tile partial logit (leading h dim squeezed)
    acc_ref : (TN, TH)   f32 hidden accumulator scratch
    """
    k = pl.program_id(2)

    @pl.when(k == 0)
    def _():
        acc_ref[...] = jnp.zeros_like(acc_ref)

    # Partial first matmul on the MXU; always accumulate in f32.
    acc_ref[...] += jnp.dot(
        x_ref[...], w1_ref[...], preferred_element_type=jnp.float32
    )

    @pl.when(k == pl.num_programs(2) - 1)
    def _():
        hidden = acc_ref[...] + b1_ref[...]                      # (TN, TH)
        # (TN,TH)@(TH,1) would use 1/256 of the MXU output lanes; do it as a
        # VPU multiply + XLU lane reduce instead.
        o_ref[...] = jnp.sum(hidden * w2_ref[...], axis=-1, keepdims=True)


def _fused_logit_kernel(x_ref, w_ref, b_ref, o_ref, acc_ref):
    """Grid = (n_tiles, k_tiles); fused-weight path: logit = x @ w_eff + b_eff.

    x_ref  : (TN, TK)  current x chunk (f32 or bf16)
    w_ref  : (1, TK)   current w_eff chunk (f32 or bf16)
    b_ref  : (1, 1)    resident effective bias (f32)
    o_ref  : (TN, 1)   sigmoid(logit), written on the last K step
    acc_ref: (TN, 1)   f32 logit accumulator
    """
    k = pl.program_id(1)

    @pl.when(k == 0)
    def _():
        acc_ref[...] = jnp.zeros_like(acc_ref)

    x = x_ref[...].astype(jnp.float32)
    w = w_ref[...].astype(jnp.float32)
    acc_ref[...] += jnp.sum(x * w, axis=-1, keepdims=True)       # VPU + XLU

    @pl.when(k == pl.num_programs(1) - 1)
    def _():
        o_ref[...] = jax.nn.sigmoid(acc_ref[...] + b_ref[...]).astype(o_ref.dtype)


# ---------------------------------------------------------------------------
# Tiling helpers
# ---------------------------------------------------------------------------

_TILE_CANDIDATES = (16384, 8192, 4096, 2048, 1024, 512, 256, 128)


def _default_vmem_budget():
    """Scoped-VMEM budget derived from the chip, with headroom.

    v7x: 64 MiB physical -> ~48 MiB scoped; v5e/v6e: 128 MiB -> 96 MiB.
    """
    try:
        cap = int(pltpu.get_tpu_info().vmem_capacity_bytes)
    except Exception:
        cap = 128 << 20
    return max(32 << 20, min(cap - (16 << 20), 96 << 20))


def _pick_divisor_tile(total, cap):
    """Largest multiple-of-128 tile <= cap that divides `total`."""
    for cand in _TILE_CANDIDATES:
        if cand <= cap and total % cand == 0:
            return cand
    return total  # tiny / odd K: single full-width block (block == array dim)


def _pick_tn(n):
    """Batch tile: full batch if small, else a multiple of 8 (f32 sublane)."""
    if n <= 8:
        return n
    for cand in (256, 128, 64, 32, 16, 8):
        if n % cand == 0:
            return cand
    return n  # fall back to full batch dim (always legal)


# ---------------------------------------------------------------------------
# Streamed-hidden path (exact module math; use when hidden must materialize)
# ---------------------------------------------------------------------------

def discriminator_forward(x_nchw, w1_t, b1, w2_t, b2, *, tk=None, tn=None,
                          hidden_splits=1, stream_dtype=jnp.float32,
                          vmem_limit_bytes=None):
    """x_nchw: (N,C,H,W); w1_t: (K, hidden) (= W1.T); b1: (hidden,);
    w2_t: (hidden, 1) (= W2.T); b2: (1,). Returns (N, 1) probabilities.

    stream_dtype=jnp.bfloat16 halves the W1/x HBM stream (accumulation stays
    f32); hidden_splits=2 adds a second parallel grid axis for v7x's 2 TCs.
    """
    n = x_nchw.shape[0]
    x_flat = x_nchw.reshape(n, -1)              # nn.Flatten (glue, plain JAX)
    k_total = x_flat.shape[1]
    h_total = w1_t.shape[1]
    assert h_total % hidden_splits == 0
    th = h_total // hidden_splits

    elem = jnp.dtype(stream_dtype).itemsize
    if vmem_limit_bytes is None:
        vmem_limit_bytes = _default_vmem_budget()
    if tn is None:
        tn = _pick_tn(n)
    assert n % tn == 0
    if tk is None:
        # Keep 2 (double-buffer) * tk*th*elem <= budget/2.
        tk = _pick_divisor_tile(k_total,
                                max(128, vmem_limit_bytes // (4 * th * elem)))
    assert k_total % tk == 0, "tk must divide the flattened feature count"

    num_n, num_h, num_k = n // tn, hidden_splits, k_total // tk

    x_s = x_flat.astype(stream_dtype)
    w1_s = w1_t.astype(stream_dtype)
    b1_2d = b1.reshape(1, h_total).astype(jnp.float32)
    w2_row = w2_t.reshape(1, h_total).astype(jnp.float32)   # (H,1) -> (1,H)

    partial = pl.pallas_call(
        _hidden_stream_kernel,
        out_shape=jax.ShapeDtypeStruct((num_h, n, 1), jnp.float32),
        grid=(num_n, num_h, num_k),
        in_specs=[
            pl.BlockSpec((tn, tk), lambda i, j, k: (i, k)),   # x chunk
            pl.BlockSpec((tk, th), lambda i, j, k: (k, j)),   # W1 chunk
            pl.BlockSpec((1, th), lambda i, j, k: (0, j)),    # b1 (resident)
            pl.BlockSpec((1, th), lambda i, j, k: (0, j)),    # W2 row (resident)
        ],
        out_specs=pl.BlockSpec((None, tn, 1), lambda i, j, k: (j, i, 0)),
        scratch_shapes=[pltpu.VMEM((tn, th), jnp.float32)],
        compiler_params=pltpu.CompilerParams(
            # (batch, hidden-split) parallel (megacore-shardable), K reduction.
            dimension_semantics=("parallel", "parallel", "arbitrary"),
            vmem_limit_bytes=int(vmem_limit_bytes),
        ),
    )(x_s, w1_s, b1_2d, w2_row)

    # Tiny epilogue in plain JAX: sum per-split partial logits, bias, sigmoid.
    logits = jnp.sum(partial, axis=0) + b2.reshape(1, 1)     # (N, 1)
    return jax.nn.sigmoid(logits)


# ---------------------------------------------------------------------------
# Fused-weight path (inference: W1/w2 static across calls)
# ---------------------------------------------------------------------------

def fuse_discriminator_weights(w1_t, b1, w2_t, b2):
    """Precompute once: w_eff (1,K), b_eff (1,1) so that
    sigmoid((x@W1+b1)@w2+b2) == sigmoid(x @ w_eff.T + b_eff)."""
    w1f = w1_t.astype(jnp.float32)
    w2f = w2_t.astype(jnp.float32)
    w_eff = (w1f @ w2f).reshape(1, -1)                               # (1, K)
    b_eff = b1.astype(jnp.float32).reshape(1, -1) @ w2f + b2.reshape(1, 1)
    return w_eff, b_eff


def discriminator_forward_fused(x_nchw, w_eff_row, b_eff, *, tk=None, tn=None,
                                stream_dtype=jnp.float32,
                                vmem_limit_bytes=None):
    """Fused Linear->Linear->Sigmoid: streams only x and the (K,) eff. weight."""
    n = x_nchw.shape[0]
    x_flat = x_nchw.reshape(n, -1)
    k_total = x_flat.shape[1]

    elem = jnp.dtype(stream_dtype).itemsize
    if vmem_limit_bytes is None:
        vmem_limit_bytes = _default_vmem_budget()
    if tn is None:
        tn = _pick_tn(n)
    assert n % tn == 0
    if tk is None:
        # 2 bufs * (tn + 1) rows of tk elems each <= budget/2.
        tk = _pick_divisor_tile(
            k_total, max(128, vmem_limit_bytes // (4 * (tn + 1) * elem)))
    assert k_total % tk == 0

    out = pl.pallas_call(
        _fused_logit_kernel,
        out_shape=jax.ShapeDtypeStruct((n, 1), jnp.float32),
        grid=(n // tn, k_total // tk),
        in_specs=[
            pl.BlockSpec((tn, tk), lambda i, k: (i, k)),      # x chunk
            pl.BlockSpec((1, tk), lambda i, k: (0, k)),       # w_eff chunk
            pl.BlockSpec((1, 1), lambda i, k: (0, 0)),        # b_eff (resident)
        ],
        out_specs=pl.BlockSpec((tn, 1), lambda i, k: (i, 0)),
        scratch_shapes=[pltpu.VMEM((tn, 1), jnp.float32)],
        compiler_params=pltpu.CompilerParams(
            dimension_semantics=("parallel", "arbitrary"),
            vmem_limit_bytes=int(vmem_limit_bytes),
        ),
    )(x_flat.astype(stream_dtype),
      w_eff_row.astype(stream_dtype),
      b_eff.astype(jnp.float32))
    return out


# ---------------------------------------------------------------------------
# Demo / correctness check
# ---------------------------------------------------------------------------

if __name__ == "__main__":
    # Small shapes consistent with the module: NCHW input that flattens to K
    # features, hidden=512, out=1.  (Real module K = 131072.)
    N, C, H, W = 2, 2, 32, 32            # flatten -> K = 2048
    K = C * H * W
    HIDDEN, OUT = 512, 1

    key = jax.random.PRNGKey(0)
    kx, kw1, kb1, kw2, kb2 = jax.random.split(key, 5)

    x = jax.random.normal(kx, (N, C, H, W), dtype=jnp.float32)

    # PyTorch-Linear-like init scale: U(-1/sqrt(in), 1/sqrt(in)).
    lim1 = 1.0 / jnp.sqrt(jnp.float32(K))
    w1_t = jax.random.uniform(kw1, (K, HIDDEN), jnp.float32, -lim1, lim1)   # W1.T
    b1 = jax.random.uniform(kb1, (HIDDEN,), jnp.float32, -lim1, lim1)
    lim2 = 1.0 / jnp.sqrt(jnp.float32(HIDDEN))
    w2_t = jax.random.uniform(kw2, (HIDDEN, OUT), jnp.float32, -lim2, lim2)  # W2.T
    b2 = jax.random.uniform(kb2, (OUT,), jnp.float32, -lim2, lim2)

    # Reference in plain JAX (same math as the PyTorch forward).
    x_flat = x.reshape(N, -1)
    ref = jax.nn.sigmoid((x_flat @ w1_t + b1) @ w2_t + b2)

    # 1) Streamed f32 path (exact module math); tk=512 -> 4 K steps.
    y1 = jax.block_until_ready(
        discriminator_forward(x, w1_t, b1, w2_t, b2, tk=512))
    assert y1.shape == (N, 1)
    assert jnp.allclose(y1, ref, atol=1e-5, rtol=1e-5), "streamed f32 mismatch"

    # 2) Hidden-split layout (v7x dual-TC), still f32 / exact.
    y2 = jax.block_until_ready(
        discriminator_forward(x, w1_t, b1, w2_t, b2, tk=512, hidden_splits=2))
    assert jnp.allclose(y2, ref, atol=1e-5, rtol=1e-5), "hidden-split mismatch"

    # 3) bf16 weight/activation streaming (halves HBM traffic), looser tol.
    y3 = jax.block_until_ready(
        discriminator_forward(x, w1_t, b1, w2_t, b2, tk=512,
                              stream_dtype=jnp.bfloat16))
    assert jnp.allclose(y3, ref, atol=3e-2), "bf16 streamed mismatch"

    # 4) Fused-weight inference path (W1@w2 precomputed once).
    w_eff, b_eff = fuse_discriminator_weights(w1_t, b1, w2_t, b2)
    y4 = jax.block_until_ready(
        discriminator_forward_fused(x, w_eff, b_eff, tk=512))
    assert y4.shape == (N, 1)
    assert jnp.allclose(y4, ref, atol=5e-5, rtol=1e-4), "fused-weight mismatch"

    print("KERNEL_OK")
</pallas_src>

<mosaic_0001>
module attributes {stable_mosaic.version = 11 : i64} {
  func.func @_hidden_stream_kernel(%arg0: i32, %arg1: i32, %arg2: i32, %arg3: memref<2x512xf32, #tpu.memory_space<vmem>>, %arg4: memref<512x512xf32, #tpu.memory_space<vmem>>, %arg5: memref<1x512xf32, #tpu.memory_space<vmem>>, %arg6: memref<1x512xf32, #tpu.memory_space<vmem>>, %arg7: memref<1x2x1xf32, #tpu.memory_space<vmem>>, %arg8: memref<2x512xf32, #tpu.memory_space<vmem>>) attributes {dimension_semantics = [#tpu.dimension_semantics<parallel>, #tpu.dimension_semantics<parallel>, #tpu.dimension_semantics<arbitrary>], iteration_bounds = array<i64: 1, 1, 4>, scalar_prefetch = 0 : i64, scratch_operands = 1 : i64, tpu.core_type = #tpu.core_type<tc>, window_params = [{transform_indices = @transform_0, window_bounds = array<i64: 2, 512>}, {transform_indices = @transform_1, window_bounds = array<i64: 512, 512>}, {transform_indices = @transform_2, window_bounds = array<i64: 1, 512>}, {transform_indices = @transform_3, window_bounds = array<i64: 1, 512>}, {transform_indices = @transform_4, window_bounds = array<i64: 1, 2, 1>}]} {
    %c0_i32 = arith.constant 0 : i32
    %0 = arith.cmpi eq, %arg2, %c0_i32 : i32
    %1 = arith.extui %0 : i1 to i32
    %c0_i32_0 = arith.constant 0 : i32
    %2 = arith.cmpi ne, %1, %c0_i32_0 : i32
    scf.if %2 {
      %cst_9 = arith.constant 0.000000e+00 : f32
      %12 = vector.broadcast %cst_9 : f32 to vector<2x512xf32>
      %c0_10 = arith.constant 0 : index
      %c0_11 = arith.constant 0 : index
      %13 = vector.load %arg8[%c0_10, %c0_11] : memref<2x512xf32, #tpu.memory_space<vmem>>, vector<2x512xf32>
      tpu.vector_store %arg8[%c0_10, %c0_11], %12 {strides = array<i32>} : memref<2x512xf32, #tpu.memory_space<vmem>>, vector<2x512xf32>,
    } else {
    }
    %c0 = arith.constant 0 : index
    %c0_1 = arith.constant 0 : index
    %3 = vector.load %arg8[%c0, %c0_1] : memref<2x512xf32, #tpu.memory_space<vmem>>, vector<2x512xf32>
    %c0_2 = arith.constant 0 : index
    %c0_3 = arith.constant 0 : index
    %4 = vector.load %arg3[%c0_2, %c0_3] : memref<2x512xf32, #tpu.memory_space<vmem>>, vector<2x512xf32>
    %c0_4 = arith.constant 0 : index
    %c0_5 = arith.constant 0 : index
    %5 = vector.load %arg4[%c0_4, %c0_5] : memref<512x512xf32, #tpu.memory_space<vmem>>, vector<512x512xf32>
    %cst = arith.constant dense<0.000000e+00> : vector<2x512xf32>
    %6 = tpu.matmul %4, %5, %cst {dimension_numbers = #tpu.dot_dimension_numbers<[1], [0], [0], [1], [0, 0, 1, 1], [], []>} : vector<2x512xf32>, vector<512x512xf32>, vector<2x512xf32> -> vector<2x512xf32>
    %7 = arith.addf %3, %6 : vector<2x512xf32>
    %c0_6 = arith.constant 0 : index
    %c0_7 = arith.constant 0 : index
    %8 = vector.load %arg8[%c0_6, %c0_7] : memref<2x512xf32, #tpu.memory_space<vmem>>, vector<2x512xf32>
    tpu.vector_store %arg8[%c0_6, %c0_7], %7 {strides = array<i32>} : memref<2x512xf32, #tpu.memory_space<vmem>>, vector<2x512xf32>,
    %c3_i32 = arith.constant 3 : i32
    %9 = arith.cmpi eq, %arg2, %c3_i32 : i32
    %10 = arith.extui %9 : i1 to i32
    %c0_i32_8 = arith.constant 0 : i32
    %11 = arith.cmpi ne, %10, %c0_i32_8 : i32
    scf.if %11 {
      %c0_9 = arith.constant 0 : index
      %c0_10 = arith.constant 0 : index
      %12 = vector.load %arg8[%c0_9, %c0_10] : memref<2x512xf32, #tpu.memory_space<vmem>>, vector<2x512xf32>
      %c0_11 = arith.constant 0 : index
      %c0_12 = arith.constant 0 : index
      %13 = vector.load %arg5[%c0_11, %c0_12] : memref<1x512xf32, #tpu.memory_space<vmem>>, vector<1x512xf32>
      %14 = vector.broadcast %13 : vector<1x512xf32> to vector<2x512xf32>
      %15 = arith.addf %12, %14 : vector<2x512xf32>
      %c0_13 = arith.constant 0 : index
      %c0_14 = arith.constant 0 : index
      %16 = vector.load %arg6[%c0_13, %c0_14] : memref<1x512xf32, #tpu.memory_space<vmem>>, vector<1x512xf32>
      %17 = vector.broadcast %16 : vector<1x512xf32> to vector<2x512xf32>
      %18 = arith.mulf %15, %17 : vector<2x512xf32>
      %cst_15 = arith.constant dense<0.000000e+00> : vector<2xf32>
      %19 = vector.multi_reduction <add>, %18, %cst_15 [1] : vector<2x512xf32> to vector<2xf32>
      %20 = vector.shape_cast %19 : vector<2xf32> to vector<2x1xf32>
      %c0_16 = arith.constant 0 : index
      %c0_17 = arith.constant 0 : index
      %c0_18 = arith.constant 0 : index
      %21 = vector.load %arg7[%c0_16, %c0_17, %c0_18] : memref<1x2x1xf32, #tpu.memory_space<vmem>>, vector<1x2x1xf32>
      %22 = vector.shape_cast %21 : vector<1x2x1xf32> to vector<2x1xf32>
      %23 = vector.shape_cast %20 : vector<2x1xf32> to vector<1x2x1xf32>
      tpu.vector_store %arg7[%c0_16, %c0_17, %c0_18], %23 {strides = array<i32>} : memref<1x2x1xf32, #tpu.memory_space<vmem>>, vector<1x2x1xf32>,
    } else {
    }
    return
  }
  func.func @transform_0(%arg0: i32, %arg1: i32, %arg2: i32) -> (i32, i32) {
    %c0_i32 = arith.constant 0 : i32
    return %arg0, %arg2 : i32, i32
  }
  func.func @transform_1(%arg0: i32, %arg1: i32, %arg2: i32) -> (i32, i32) {
    %c0_i32 = arith.constant 0 : i32
    return %arg2, %arg1 : i32, i32
  }
  func.func @transform_2(%arg0: i32, %arg1: i32, %arg2: i32) -> (i32, i32) {
    %c0_i32 = arith.constant 0 : i32
    %c0_i32_0 = arith.constant 0 : i32
    return %c0_i32, %arg1 : i32, i32
  }
  func.func @transform_3(%arg0: i32, %arg1: i32, %arg2: i32) -> (i32, i32) {
    %c0_i32 = arith.constant 0 : i32
    %c0_i32_0 = arith.constant 0 : i32
    return %c0_i32, %arg1 : i32, i32
  }
  func.func @transform_4(%arg0: i32, %arg1: i32, %arg2: i32) -> (i32, i32, i32) {
    %c0_i32 = arith.constant 0 : i32
    %c0_i32_0 = arith.constant 0 : i32
    return %arg1, %arg0, %c0_i32 : i32, i32, i32
  }
}

</mosaic_0001>

<bundles_post_ra>
// kernel: tpu_custom_call.1
= control target key start
LH: loop header
LB: loop body
LE: loop exit
PB: predicated region body
PF: predicated region fallthrough
CT: control target
= control target key end

     0   :  { %s1957_s0 = inlined_call_operand.hbm [shape: f32[2,2048], index: 0, kind: input, shape index: {}]   ;;  %s1958_s1 = inlined_call_operand.hbm [shape: f32[2048,512], index: 1, kind: input, shape index: {}]   ;;  %s1959_s2 = inlined_call_operand.hbm [shape: f32[1,512], index: 2, kind: input, shape index: {}]   ;;  %s1960_s3 = inlined_call_operand.hbm [shape: f32[1,512], index: 3, kind: input, shape index: {}]   ;;  %s1961_s4 = inlined_call_operand.vmem [shape: f32[1,2,1], index: 4, kind: output, shape index: {}]  }
   0x1   :  { %1967 = sst [smem:[#allocation14_spill]] %s1957_s0 }
   0x2   :  { %9 = vsyncpa [#allocation4], 0 }
   0x3   :  { %11 = vsyncpa [#allocation4 + $0x1], 0 }
   0x4   :  { %12 = vsyncpa [#allocation6], 0 }
   0x5   :  { %14 = vsyncpa [#allocation6 + $0x1], 0 }
   0x6   :  { %15 = vsyncpa [#allocation9], 0  ;;  %s1493_s15 = smov 0   ;;  %s1495_s16 = smov 0  }
   0x7   :  { %s1497_s17 = smov 0   ;;  %s1499_s18 = smov 0  }
   0x8   :  { %s1501_s19 = smov 0   ;;  %s1503_s20 = smov 0  }
   0x9 LB: > { %s1966_s21 = sadd.s32 4294967295, %s1458_s20   ;;  %p62_p0 = scmp.ne.s32.totalorder %s1442_s16, %s1438_s15  ;;  %s1458_s20 = sphi %s1503_s20, %s21_s20   ;;  %s1454_s19 = sphi %s1501_s19, %s1982_s19   ;;  %s1450_s18 = sphi %s1499_s18, %s1981_s18   ;;  %s1446_s17 = sphi %s1497_s17, %s1980_s17   ;;  %s1442_s16 = sphi %s1495_s16, %s1979_s16   ;;  %s1438_s15 = sphi %s1493_s15, %s1978_s15  }
   0xa   : > { %p1525_p1 = scmp.eq.s32.totalorder %s1966_s21, 0  ;;  %p1178_p2 = scmp.ge.s32.totalorder %s1458_s20, 1 }
   0xb   : > { %p181_p3 = scmp.lt.s32.totalorder %s1458_s20, 5  ;;  %s1460_s25 = smov [#allocation7]  }
   0xc   : > { %s1968_s22 = scalar_select %p1525_p1, 1, 0 }
   0xd   : > { %p1533_p4 = por %p1525_p1, %p62_p0  ;;  %p1537_p5 = pnand %p1178_p2, %p181_p3 }
   0xe   : > { %s197_s26 = sshll.u32 %s1460_s25, 4  ;;  %s1461_s27 = smov [#allocation8]   ;;  %s198_s26 = int_to_ptr.vmem [resolvable:$true] %s197_s26 }
   0xf   : > { %s1969_s23 = scalar_select %p1533_p4, 1, 0 }
  0x10   : > { %s1970_s24 = scalar_select %p1537_p5, 1, 0 }
  0x11   : > { %p1214_p6 = pneg %p1537_p5  ;;  %s211_s28 = sshll.u32 %s1461_s27, 4  ;;  %s212_s28 = int_to_ptr.vmem [resolvable:$true] %s211_s28 }
  0x12   : > { %s1299_s30 = scalar_lea.vmem %s198_s26, 64  ;;  %p1307_p12 = scmp.lt.s32.totalorder %s198_s26, %s198_s26 }
  0x13   : > { %p1545_p7 = pnand %p1214_p6, %p1525_p1  ;;  %p1300_p9 = scmp.ne.s32.totalorder %s198_s26, %s1299_s30 }
  0x14   : > { %p1308_p13 = scmp.lt.s32.totalorder %s1299_s30, %s1299_s30 }
  0x15   : > { %p1290_p8 = pneg %p1545_p7 }
  0x16   : > { %p1309_p0 = por %p1308_p13, %p1307_p12 }
  0x17   : > { %p1302_p10 = pnand %p1300_p9, %p1290_p8 }
  0x19   : > { %p1303_p11 = pneg %p1302_p10 }
  0x1b   : > { %p1310_p2 = pnand %p1309_p0, %p1303_p11 }
  0x1d   : > { %1313 = shalt.err (!%p1310_p2)
}
  0x1e   : > { %1217 = dma.hbm_to_vmem [thread:$0]  (!%p1545_p7), %s1959_s2, 64, %s198_s26, [#allocation6]  }
  0x1f   : > { %s1325_s7 = scalar_lea.vmem %s212_s28, 64  ;;  %p1333_p9 = scmp.lt.s32.totalorder %s212_s28, %s212_s28 }
  0x20   : > { %p1326_p3 = scmp.ne.s32.totalorder %s212_s28, %s1325_s7  ;;  %p1334_p10 = scmp.lt.s32.totalorder %s1325_s7, %s1325_s7 }
  0x22   : > { %p1328_p6 = pnand %p1326_p3, %p1290_p8  ;;  %p1335_p4 = por %p1334_p10, %p1333_p9 }
  0x24   : > { %p1329_p1 = pneg %p1328_p6 }
  0x26   : > { %p1336_p5 = pnand %p1335_p4, %p1329_p1 }
  0x28   : > { %1339 = shalt.err (!%p1336_p5)
}
  0x29   : > { %1220 = dma.hbm_to_vmem [thread:$0]  (!%p1545_p7), %s1960_s3, 64, %s212_s28, [#allocation9]  }
  0x2a   : > { %s33_s10 = sadd.s32 1, %s1454_s19  ;;  %s49_s11 = sadd.s32 1, %s1446_s17 }
  0x2b   : > { %p34_p1 = scmp.ge.s32.totalorder %s33_s10, 4  ;;  %p56_p4 = scmp.ne.s32.totalorder %s1446_s17, %s1442_s16 }
  0x2c   : > { %p57_p5 = scmp.eq.s32.totalorder %s1458_s20, 0  ;;  %p1230_p8 = scmp.lt.s32.totalorder %s1458_s20, 4 }
  0x2d   : > { %s1984_s10 = smov (%p34_p1, %s33_s10), 0  ;;  %s1576_s12 = sand.u32 1, %s1446_s17  }
  0x2e   : > { %p58_p11 = por %p57_p5, %p56_p4  ;;  %s45_s13 = ssub.s32 %s1454_s19, %s1984_s10 }
  0x2f   : > { %p47_p12 = scmp.eq.s32.totalorder %s45_s13, 0  ;;  %s1182_s14 = sshll.u32 %s1576_s12, 3 }
  0x30   : > { %s1199_s15 = sshll.u32 %s1454_s19, 7  ;;  %s1972_s0 = sld [smem:[#allocation14_spill]] }
  0x31   : > { %s1583_s25 = scalar_select %p47_p12, %s1446_s17, %s49_s11  }
  0x32   : > { %s226_s29 = scalar_lea.vmem [#allocation3], %s1182_s14  ;;  %p1590_p7 = pnand %p1230_p8, %p58_p11 }
  0x33   : > { %s236_s30 = sshll.u32 %s226_s29, 4  ;;  %s1185_s6 = sshll.u32 %s1576_s12, 11  ;;  %s237_s30 = int_to_ptr.vmem [resolvable:$true] %s236_s30 }
  0x34   : > { %s1201_s7 = sshll.u32 %s1454_s19, 15  ;;  %s223_s8 = scalar_lea.sflag [#allocation4], %s1576_s12 }
  0x35   : > { %p1342_p13 = pneg %p1590_p7  ;;  %s1353_s9 = scalar_lea.vmem %s237_s30, 128 }
  0x36   : > { %s234_s28 = scalar_lea.hbm %s1972_s0, %s1199_s15  ;;  %p1354_p0 = scmp.ne.s32.totalorder %s237_s30, %s1353_s9 }
  0x37   : > { %s1462_s11 = smov [#allocation3]  }
  0x38   : > { %p1356_p2 = pnand %p1354_p0, %p1342_p13  ;;  %s1358_s13 = sshll.u32 %s1462_s11, 4  ;;  %s1359_s13 = int_to_ptr.vmem [resolvable:$false] %s1358_s13 }
  0x39   : > { %s1360_s14 = scalar_lea.vmem %s1359_s13, 256  ;;  %p1361_p6 = scmp.lt.s32.totalorder %s237_s30, %s1359_s13 }
  0x3a   : > { %p1357_p3 = pneg %p1356_p2  ;;  %p1362_p9 = scmp.lt.s32.totalorder %s1360_s14, %s1353_s9 }
  0x3c   : > { %p1363_p10 = por %p1362_p9, %p1361_p6 }
  0x3e   : > { %p1364_p1 = pnand %p1363_p10, %p1357_p3 }
  0x40   : > { %1367 = shalt.err (!%p1364_p1)
}
  0x41   : > { %1224 = dma.hbm_to_vmem [thread:$0]  (!%p1590_p7), %s234_s28, 128, %s237_s30, %s223_s8  }
  0x42   : > { %s247_s12 = scalar_lea.vmem [#allocation5], %s1185_s6  ;;  %s243_s26 = sand.u32 1, %s1458_s20  }
  0x43   : > { %s257_s15 = sshll.u32 %s247_s12, 4  ;;  %s256_s11 = scalar_lea.hbm %s1958_s1, %s1201_s7  ;;  %s258_s15 = int_to_ptr.vmem [resolvable:$true] %s257_s15 }
  0x44   : > { %s244_s21 = scalar_lea.sflag [#allocation6], %s243_s26  ;;  %s1381_s0 = scalar_lea.vmem %s258_s15, 32768 }
  0x45   : > { %p1382_p4 = scmp.ne.s32.totalorder %s258_s15, %s1381_s0  ;;  %s1463_s9 = smov [#allocation5]  }
  0x46   : > { %s1386_s13 = sshll.u32 %s1463_s9, 4  ;;  %s1387_s13 = int_to_ptr.vmem [resolvable:$false] %s1386_s13 }
  0x47   : > { %p1384_p5 = pnand %p1382_p4, %p1342_p13  ;;  %s1388_s14 = scalar_lea.vmem %s1387_s13, 65536 }
  0x48   : > { %p1389_p11 = scmp.lt.s32.totalorder %s258_s15, %s1387_s13  ;;  %p1390_p12 = scmp.lt.s32.totalorder %s1388_s14, %s1381_s0 }
  0x49   : > { %p1385_p8 = pneg %p1384_p5 }
  0x4a   : > { %p1391_p0 = por %p1390_p12, %p1389_p11 }
  0x4c   : > { %p1392_p2 = pnand %p1391_p0, %p1385_p8 }
  0x4e   : > { %1395 = shalt.err (!%p1392_p2)
}
  0x4f   : > { %s1464_s28 = smov 512   ;;  %s1465_s30 = smov 32  }
  0x50   : > { %1227 = dma.hbm_to_vmem [thread:$0]  (!%p1590_p7), %s256_s11, 32768, %s258_s15, %s244_s21, %s1464_s28, %s1464_s28, %s1465_s30  }
  0x51   : > { %p1974_p3 = scmp.ne.s32.totalorder %s1970_s24, 0 }
  0x52   : > { %s271_s6 = sand.u32 (!%p1974_p3), 1, %s1442_s16   ;;  %p1975_p13 = scmp.ne.s32.totalorder (!%p1974_p3), %s1969_s23, 0 }
  0x53   : > { %269 = sbr.rel (%p1974_p3) target bundleno = 611 (0x263), region = 36  ;;  %s1190_s7 = sshll.u32 (!%p1974_p3), %s271_s6, 3 }
  0x54   : > { %s272_s8 = scalar_lea.sflag (!%p1974_p3), [#allocation4], %s271_s6  ;;  %s1616_s12 = scalar_lea.vmem (!%p1974_p3), [#allocation3], %s1190_s7 }
  0x58   : > { %1421 = dma.done.wait (%p1975_p13), %s272_s8, 128  }
  0x59   : > { %1423 = vsyncadd (%p1975_p13), %s272_s8, 4294967168  ;;  %s1976_s0 = sadd.s32 4294967295, %s1458_s20   ;;  %s1191_s21 = sshll.u32 %s271_s6, 11 }
  0x5a   : > { %s280_s5 = sand.u32 1, %s1976_s0   ;;  %s1624_s24 = scalar_lea.vmem [#allocation5], %s1191_s21 }
  0x5b   : > { %s281_s15 = scalar_lea.sflag [#allocation6], %s280_s5 }
  0x5c   : > { %1425 = dma.done.wait (%p1975_p13), %s281_s15, 32768  }
  0x5d   : > { %1427 = vsyncadd (%p1975_p13), %s281_s15, 4294934528  ;;  %p1977_p7 = scmp.ne.s32.totalorder %s1968_s22, 0 }
  0x5f   : > { %1429 = dma.done.wait (%p1977_p7), [#allocation6], 64  }
  0x60   : > { %1431 = vsyncadd (%p1977_p7), [#allocation6], 4294967232 }
  0x61   : > { %1433 = dma.done.wait (%p1977_p7), [#allocation9], 64  }
  0x62   : > { %1435 = vsyncadd (%p1977_p7), [#allocation9], 4294967232  ;;  %p1194_p6 = scmp.ne.s32.totalorder %s1450_s18, 0 }
  0x64   : > { %339 = sbr.rel (%p1194_p6) target bundleno = 107 (0x6b), region = 56 }
  0x69   : > { %v1466_v0 = vmov 0.0  }
  0x6a   : > { %340 = vst [vmem:[#allocation2] sm:$0xff] %v1466_v0 }
  0x6b PF: > { %v404_v1 = vld [vmem:[%s1624_s24 + $0x1e8] sm:$0xff]  ;;  %v403_v3 = vld [vmem:[%s1624_s24 + $0x1e0] sm:$0xff]  ;;  %p1195_p9 = scmp.ne.s32.totalorder %s1450_s18, 3 }
  0x6c   : > { %v532_v2 = vld [vmem:[%s1624_s24 + $0x5e8] sm:$0xff]  ;;  %621 = vmatprep.subr.mxu0 %v404_v1  ;;  %v531_v4 = vld [vmem:[%s1624_s24 + $0x5e0] sm:$0xff] }
  0x6d   : > { %692 = vmatprep.subr.mxu1 %v532_v2  ;;  %v400_v5 = vld [vmem:[%s1624_s24 + $0x1c8] sm:$0xff]  ;;  %622 = vmatpush1.msra.mxu0 %v403_v3  ;;  %v399_v7 = vld [vmem:[%s1624_s24 + $0x1c0] sm:$0xff] }
  0x6e   : > { %v528_v6 = vld [vmem:[%s1624_s24 + $0x5c8] sm:$0xff]  ;;  %693 = vmatpush1.msra.mxu1 %v531_v4  ;;  %v527_v8 = vld [vmem:[%s1624_s24 + $0x5c0] sm:$0xff]  ;;  %623 = vmatprep.subr.mxu0 %v400_v5 }
  0x6f   : > { %v396_v9 = vld [vmem:[%s1624_s24 + $0x1a8] sm:$0xff]  ;;  %694 = vmatprep.subr.mxu1 %v528_v6  ;;  %v395_v11 = vld [vmem:[%s1624_s24 + $0x1a0] sm:$0xff]  ;;  %624 = vmatpush1.msra.mxu0 %v399_v7 }
  0x70   : > { %v524_v10 = vld [vmem:[%s1624_s24 + $0x5a8] sm:$0xff]  ;;  %v523_v12 = vld [vmem:[%s1624_s24 + $0x5a0] sm:$0xff]  ;;  %695 = vmatpush1.msra.mxu1 %v527_v8  ;;  %625 = vmatprep.subr.mxu0 %v396_v9 }
  0x71   : > { %v392_v13 = vld [vmem:[%s1624_s24 + $0x188] sm:$0xff]  ;;  %696 = vmatprep.subr.mxu1 %v524_v10  ;;  %v391_v15 = vld [vmem:[%s1624_s24 + $0x180] sm:$0xff]  ;;  %626 = vmatpush1.msra.mxu0 %v395_v11 }
  0x72   : > { %v520_v14 = vld [vmem:[%s1624_s24 + $0x588] sm:$0xff]  ;;  %v519_v16 = vld [vmem:[%s1624_s24 + $0x580] sm:$0xff]  ;;  %697 = vmatpush1.msra.mxu1 %v523_v12  ;;  %627 = vmatprep.subr.mxu0 %v392_v13 }
  0x73   : > { %v388_v17 = vld [vmem:[%s1624_s24 + $0x168] sm:$0xff]  ;;  %698 = vmatprep.subr.mxu1 %v520_v14  ;;  %v387_v19 = vld [vmem:[%s1624_s24 + $0x160] sm:$0xff]  ;;  %628 = vmatpush1.msra.mxu0 %v391_v15 }
  0x74   : > { %v516_v18 = vld [vmem:[%s1624_s24 + $0x568] sm:$0xff]  ;;  %v515_v20 = vld [vmem:[%s1624_s24 + $0x560] sm:$0xff]  ;;  %699 = vmatpush1.msra.mxu1 %v519_v16  ;;  %629 = vmatprep.subr.mxu0 %v388_v17 }
  0x75   : > { %v384_v21 = vld [vmem:[%s1624_s24 + $0x148] sm:$0xff]  ;;  %700 = vmatprep.subr.mxu1 %v516_v18  ;;  %v383_v23 = vld [vmem:[%s1624_s24 + $0x140] sm:$0xff]  ;;  %630 = vmatpush1.msra.mxu0 %v387_v19 }
  0x76   : > { %v512_v22 = vld [vmem:[%s1624_s24 + $0x548] sm:$0xff]  ;;  %v511_v24 = vld [vmem:[%s1624_s24 + $0x540] sm:$0xff]  ;;  %701 = vmatpush1.msra.mxu1 %v515_v20  ;;  %631 = vmatprep.subr.mxu0 %v384_v21 }
  0x77   : > { %v380_v25 = vld [vmem:[%s1624_s24 + $0x128] sm:$0xff]  ;;  %702 = vmatprep.subr.mxu1 %v512_v22  ;;  %v379_v27 = vld [vmem:[%s1624_s24 + $0x120] sm:$0xff]  ;;  %632 = vmatpush1.msra.mxu0 %v383_v23 }
  0x78   : > { %v508_v26 = vld [vmem:[%s1624_s24 + $0x528] sm:$0xff]  ;;  %v507_v28 = vld [vmem:[%s1624_s24 + $0x520] sm:$0xff]  ;;  %703 = vmatpush1.msra.mxu1 %v511_v24  ;;  %633 = vmatprep.subr.mxu0 %v380_v25 }
  0x79   : > { %v376_v29 = vld [vmem:[%s1624_s24 + $0x108] sm:$0xff]  ;;  %704 = vmatprep.subr.mxu1 %v508_v26  ;;  %v375_v31 = vld [vmem:[%s1624_s24 + $0x100] sm:$0xff]  ;;  %634 = vmatpush1.msra.mxu0 %v379_v27 }
  0x7a   : > { %v504_v30 = vld [vmem:[%s1624_s24 + $0x508] sm:$0xff]  ;;  %v503_v32 = vld [vmem:[%s1624_s24 + $0x500] sm:$0xff]  ;;  %705 = vmatpush1.msra.mxu1 %v507_v28  ;;  %635 = vmatprep.subr.mxu0 %v376_v29 }
  0x7b   : > { %v372_v33 = vld [vmem:[%s1624_s24 + $0xe8] sm:$0xff]  ;;  %706 = vmatprep.subr.mxu1 %v504_v30  ;;  %v371_v35 = vld [vmem:[%s1624_s24 + $0xe0] sm:$0xff]  ;;  %636 = vmatpush1.msra.mxu0 %v375_v31  ;;  %v1467_v31 = vmov 1983009808  }
  0x7c   : > { %v500_v34 = vld [vmem:[%s1624_s24 + $0x4e8] sm:$0xff]  ;;  %v499_v36 = vld [vmem:[%s1624_s24 + $0x4e0] sm:$0xff]  ;;  %707 = vmatpush1.msra.mxu1 %v503_v32  ;;  %637 = vmatprep.subr.mxu0 %v372_v33  ;;  %v602_v32 = vunpack.c.l.s4 %v1467_v31  ;;  %v604_v33 = vlaneseq  ;;  %v389_v31 = vld [vmem:[%s1624_s24 + $0x170] sm:$0xff] }
  0x7d   : > { %v368_v37 = vld [vmem:[%s1624_s24 + $0xc8] sm:$0xff]  ;;  %708 = vmatprep.subr.mxu1 %v500_v34  ;;  %v367_v39 = vld [vmem:[%s1624_s24 + $0xc0] sm:$0xff]  ;;  %638 = vmatpush1.msra.mxu0 %v371_v35 }
  0x7e   : > { %v496_v38 = vld [vmem:[%s1624_s24 + $0x4c8] sm:$0xff]  ;;  %v495_v40 = vld [vmem:[%s1624_s24 + $0x4c0] sm:$0xff]  ;;  %709 = vmatpush1.msra.mxu1 %v499_v36  ;;  %639 = vmatprep.subr.mxu0 %v368_v37 }
  0x7f   : > { %v364_v41 = vld [vmem:[%s1624_s24 + $0xa8] sm:$0xff]  ;;  %710 = vmatprep.subr.mxu1 %v496_v38  ;;  %v363_v43 = vld [vmem:[%s1624_s24 + $0xa0] sm:$0xff]  ;;  %640 = vmatpush1.msra.mxu0 %v367_v39 }
  0x80   : > { %v492_v42 = vld [vmem:[%s1624_s24 + $0x4a8] sm:$0xff]  ;;  %v491_v44 = vld [vmem:[%s1624_s24 + $0x4a0] sm:$0xff]  ;;  %711 = vmatpush1.msra.mxu1 %v495_v40  ;;  %641 = vmatprep.subr.mxu0 %v364_v41 }
  0x81   : > { %v360_v45 = vld [vmem:[%s1624_s24 + $0x88] sm:$0xff]  ;;  %712 = vmatprep.subr.mxu1 %v492_v42  ;;  %v359_v47 = vld [vmem:[%s1624_s24 + $0x80] sm:$0xff]  ;;  %642 = vmatpush1.msra.mxu0 %v363_v43  ;;  %v603_v42 = vunpack.c.0.s8 %v602_v32  ;;  %v1741_v43 = vshrl.u32 %v604_v33, 7  ;;  %v517_v32 = vld [vmem:[%s1624_s24 + $0x570] sm:$0xff] }
  0x82   : > { %v488_v46 = vld [vmem:[%s1624_s24 + $0x488] sm:$0xff]  ;;  %v487_v48 = vld [vmem:[%s1624_s24 + $0x480] sm:$0xff]  ;;  %713 = vmatpush1.msra.mxu1 %v491_v44  ;;  %643 = vmatprep.subr.mxu0 %v360_v45  ;;  %v386_v33 = vld [vmem:[%s1624_s24 + $0x158] sm:$0xff] }
  0x83   : > { %v356_v49 = vld [vmem:[%s1624_s24 + $0x68] sm:$0xff]  ;;  %714 = vmatprep.subr.mxu1 %v488_v46  ;;  %v355_v51 = vld [vmem:[%s1624_s24 + $0x60] sm:$0xff]  ;;  %644 = vmatpush1.msra.mxu0 %v359_v47 }
  0x84   : > { %v484_v50 = vld [vmem:[%s1624_s24 + $0x468] sm:$0xff]  ;;  %v483_v52 = vld [vmem:[%s1624_s24 + $0x460] sm:$0xff]  ;;  %715 = vmatpush1.msra.mxu1 %v487_v48  ;;  %645 = vmatprep.subr.mxu0 %v356_v49  ;;  %v342_v48 = vld [vmem:[%s1616_s12] sm:$0xff] }
  0x85   : > { %v352_v53 = vld [vmem:[%s1624_s24 + $0x48] sm:$0xff]  ;;  %716 = vmatprep.subr.mxu1 %v484_v50  ;;  %v351_v55 = vld [vmem:[%s1624_s24 + $0x40] sm:$0xff]  ;;  %646 = vmatpush1.msra.mxu0 %v355_v51 }
  0x86   : > { %v480_v54 = vld [vmem:[%s1624_s24 + $0x448] sm:$0xff]  ;;  %v479_v56 = vld [vmem:[%s1624_s24 + $0x440] sm:$0xff]  ;;  %717 = vmatpush1.msra.mxu1 %v483_v52  ;;  %647 = vmatprep.subr.mxu0 %v352_v53  ;;  %v1753_v53 = vsub.s32 %v603_v42, %v1741_v43  ;;  %v506_v42 = vld [vmem:[%s1624_s24 + $0x518] sm:$0xff] }
  0x87   : > { %v348_v57 = vld [vmem:[%s1624_s24 + $0x28] sm:$0xff]  ;;  %718 = vmatprep.subr.mxu1 %v480_v54  ;;  %v347_v59 = vld [vmem:[%s1624_s24 + $0x20] sm:$0xff]  ;;  %648 = vmatpush1.msra.mxu0 %v351_v55 }
  0x88   : > { %v476_v58 = vld [vmem:[%s1624_s24 + $0x428] sm:$0xff]  ;;  %v475_v60 = vld [vmem:[%s1624_s24 + $0x420] sm:$0xff]  ;;  %719 = vmatpush1.msra.mxu1 %v479_v56  ;;  %649 = vmatprep.subr.mxu0 %v348_v57  ;;  %v600_v56 = vcombine.high %v342_v48, %v342_v48 }
  0x89   : > { %v344_v61 = vld [vmem:[%s1624_s24 + $0x8] sm:$0xff]  ;;  %720 = vmatprep.subr.mxu1 %v476_v58  ;;  %v343_v63 = vld [vmem:[%s1624_s24] sm:$0xff]  ;;  %650 = vmatpush1.msra.mxu0 %v347_v59 }
  0x8a   : > { %v472_v62 = vld [vmem:[%s1624_s24 + $0x408] sm:$0xff]  ;;  %v471_v0 = vld [vmem:[%s1624_s24 + $0x400] sm:$0xff]  ;;  %721 = vmatpush1.msra.mxu1 %v475_v60  ;;  %651 = vmatprep.subr.mxu0 %v344_v61 }
  0x8b   : > { %v468_v1 = vld [vmem:[%s1624_s24 + $0x3e8] sm:$0xff]  ;;  %722 = vmatprep.subr.mxu1 %v472_v62  ;;  %v467_v3 = vld [vmem:[%s1624_s24 + $0x3e0] sm:$0xff]  ;;  %652 = vmatpush1.msra.mxu0 %v343_v63  ;;  %v1764_v63 = vrot.slane %v342_v48, %v1753_v53  ;;  %v373_v48 = vld [vmem:[%s1624_s24 + $0xf0] sm:$0xff] }
  0x8c   : > { %v596_v2 = vld [vmem:[%s1624_s24 + $0x7e8] sm:$0xff]  ;;  %v595_v4 = vld [vmem:[%s1624_s24 + $0x7e0] sm:$0xff]  ;;  %723 = vmatpush1.msra.mxu1 %v471_v0  ;;  %653 = vmatprep.subr.mxu0 %v468_v1 }
  0x8d   : > { %v464_v5 = vld [vmem:[%s1624_s24 + $0x3c8] sm:$0xff]  ;;  %724 = vmatprep.subr.mxu1 %v596_v2  ;;  %v463_v7 = vld [vmem:[%s1624_s24 + $0x3c0] sm:$0xff]  ;;  %654 = vmatpush2.msra.mxu0 %v467_v3  ;;  %v1769_v2 = vrot.slane %v600_v56, %v1753_v53  ;;  %v494_v56 = vld [vmem:[%s1624_s24 + $0x4b8] sm:$0xff] }
  0x8e   : > { %v592_v6 = vld [vmem:[%s1624_s24 + $0x7c8] sm:$0xff]  ;;  %v591_v8 = vld [vmem:[%s1624_s24 + $0x7c0] sm:$0xff]  ;;  %725 = vmatpush2.msra.mxu1 %v595_v4  ;;  %655 = vmatprep.subr.mxu0 %v464_v5 }
  0x8f   : > { %v460_v9 = vld [vmem:[%s1624_s24 + $0x3a8] sm:$0xff]  ;;  %726 = vmatprep.subr.mxu1 %v592_v6  ;;  %v459_v11 = vld [vmem:[%s1624_s24 + $0x3a0] sm:$0xff]  ;;  %656 = vmatpush2.msra.mxu0 %v463_v7 }
  0x90   : > { %v588_v10 = vld [vmem:[%s1624_s24 + $0x7a8] sm:$0xff]  ;;  %v587_v12 = vld [vmem:[%s1624_s24 + $0x7a0] sm:$0xff]  ;;  %727 = vmatpush2.msra.mxu1 %v591_v8  ;;  %657 = vmatprep.subr.mxu0 %v460_v9  ;;  %v1779_v9 = vcombine.high %v1764_v63, %v1764_v63 }
  0x91   : > { %v456_v13 = vld [vmem:[%s1624_s24 + $0x388] sm:$0xff]  ;;  %728 = vmatprep.subr.mxu1 %v588_v10  ;;  %v455_v15 = vld [vmem:[%s1624_s24 + $0x380] sm:$0xff]  ;;  %658 = vmatpush2.msra.mxu0 %v459_v11  ;;  %v1784_v11 = vcombine.high %v1769_v2, %v1769_v2 }
  0x92   : > { %v584_v14 = vld [vmem:[%s1624_s24 + $0x788] sm:$0xff]  ;;  %v583_v16 = vld [vmem:[%s1624_s24 + $0x780] sm:$0xff]  ;;  %729 = vmatpush2.msra.mxu1 %v587_v12  ;;  %659 = vmatprep.subr.mxu0 %v456_v13  ;;  %v406_v13 = vld [vmem:[%s1624_s24 + $0x1f8] sm:$0xff] }
  0x93   : > { %v452_v17 = vld [vmem:[%s1624_s24 + $0x368] sm:$0xff]  ;;  %730 = vmatprep.subr.mxu1 %v584_v14  ;;  %v451_v19 = vld [vmem:[%s1624_s24 + $0x360] sm:$0xff]  ;;  %660 = vmatpush2.msra.mxu0 %v455_v15  ;;  %v534_v14 = vld [vmem:[%s1624_s24 + $0x5f8] sm:$0xff] }
  0x94   : > { %v580_v18 = vld [vmem:[%s1624_s24 + $0x768] sm:$0xff]  ;;  %v579_v20 = vld [vmem:[%s1624_s24 + $0x760] sm:$0xff]  ;;  %731 = vmatpush2.msra.mxu1 %v583_v16  ;;  %661 = vmatprep.subr.mxu0 %v452_v17  ;;  %v405_v15 = vld [vmem:[%s1624_s24 + $0x1f0] sm:$0xff] }
  0x95   : > { %v448_v21 = vld [vmem:[%s1624_s24 + $0x348] sm:$0xff]  ;;  %732 = vmatprep.subr.mxu1 %v580_v18  ;;  %v447_v23 = vld [vmem:[%s1624_s24 + $0x340] sm:$0xff]  ;;  %662 = vmatpush2.msra.mxu0 %v451_v19  ;;  %v533_v16 = vld [vmem:[%s1624_s24 + $0x5f0] sm:$0xff] }
  0x96   : > { %v576_v22 = vld [vmem:[%s1624_s24 + $0x748] sm:$0xff]  ;;  %v575_v24 = vld [vmem:[%s1624_s24 + $0x740] sm:$0xff]  ;;  %733 = vmatpush2.msra.mxu1 %v579_v20  ;;  %663 = vmatprep.subr.mxu0 %v448_v21  ;;  %v402_v17 = vld [vmem:[%s1624_s24 + $0x1d8] sm:$0xff] }
  0x97   : > { %v444_v25 = vld [vmem:[%s1624_s24 + $0x328] sm:$0xff]  ;;  %734 = vmatprep.subr.mxu1 %v576_v22  ;;  %v443_v27 = vld [vmem:[%s1624_s24 + $0x320] sm:$0xff]  ;;  %664 = vmatpush2.msra.mxu0 %v447_v23  ;;  %v530_v18 = vld [vmem:[%s1624_s24 + $0x5d8] sm:$0xff] }
  0x98   : > { %v572_v26 = vld [vmem:[%s1624_s24 + $0x728] sm:$0xff]  ;;  %v571_v28 = vld [vmem:[%s1624_s24 + $0x720] sm:$0xff]  ;;  %735 = vmatpush2.msra.mxu1 %v575_v24  ;;  %665 = vmatprep.subr.mxu0 %v444_v25  ;;  %v401_v19 = vld [vmem:[%s1624_s24 + $0x1d0] sm:$0xff] }
  0x99   : > { %v440_v29 = vld [vmem:[%s1624_s24 + $0x308] sm:$0xff]  ;;  %736 = vmatprep.subr.mxu1 %v572_v26  ;;  %v439_v34 = vld [vmem:[%s1624_s24 + $0x300] sm:$0xff]  ;;  %666 = vmatpush2.msra.mxu0 %v443_v27  ;;  %v529_v20 = vld [vmem:[%s1624_s24 + $0x5d0] sm:$0xff] }
  0x9a   : > { %v568_v30 = vld [vmem:[%s1624_s24 + $0x708] sm:$0xff]  ;;  %v567_v35 = vld [vmem:[%s1624_s24 + $0x700] sm:$0xff]  ;;  %737 = vmatpush2.msra.mxu1 %v571_v28  ;;  %667 = vmatprep.subr.mxu0 %v440_v29  ;;  %v398_v21 = vld [vmem:[%s1624_s24 + $0x1b8] sm:$0xff] }
  0x9b   : > { %v436_v36 = vld [vmem:[%s1624_s24 + $0x2e8] sm:$0xff]  ;;  %738 = vmatprep.subr.mxu1 %v568_v30  ;;  %v435_v38 = vld [vmem:[%s1624_s24 + $0x2e0] sm:$0xff]  ;;  %668 = vmatpush2.msra.mxu0 %v439_v34  ;;  %v526_v22 = vld [vmem:[%s1624_s24 + $0x5b8] sm:$0xff] }
  0x9c   : > { %v564_v37 = vld [vmem:[%s1624_s24 + $0x6e8] sm:$0xff]  ;;  %v563_v39 = vld [vmem:[%s1624_s24 + $0x6e0] sm:$0xff]  ;;  %739 = vmatpush2.msra.mxu1 %v567_v35  ;;  %669 = vmatprep.subr.mxu0 %v436_v36  ;;  %v397_v23 = vld [vmem:[%s1624_s24 + $0x1b0] sm:$0xff] }
  0x9d   : > { %v432_v40 = vld [vmem:[%s1624_s24 + $0x2c8] sm:$0xff]  ;;  %740 = vmatprep.subr.mxu1 %v564_v37  ;;  %v431_v44 = vld [vmem:[%s1624_s24 + $0x2c0] sm:$0xff]  ;;  %670 = vmatpush2.msra.mxu0 %v435_v38  ;;  %v525_v24 = vld [vmem:[%s1624_s24 + $0x5b0] sm:$0xff] }
  0x9e   : > { %v560_v41 = vld [vmem:[%s1624_s24 + $0x6c8] sm:$0xff]  ;;  %v559_v45 = vld [vmem:[%s1624_s24 + $0x6c0] sm:$0xff]  ;;  %741 = vmatpush2.msra.mxu1 %v563_v39  ;;  %671 = vmatprep.subr.mxu0 %v432_v40  ;;  %v394_v25 = vld [vmem:[%s1624_s24 + $0x198] sm:$0xff] }
  0x9f   : > { %v428_v46 = vld [vmem:[%s1624_s24 + $0x2a8] sm:$0xff]  ;;  %742 = vmatprep.subr.mxu1 %v560_v41  ;;  %v427_v49 = vld [vmem:[%s1624_s24 + $0x2a0] sm:$0xff]  ;;  %672 = vmatpush2.msra.mxu0 %v431_v44  ;;  %v522_v26 = vld [vmem:[%s1624_s24 + $0x598] sm:$0xff] }
  0xa0   : > { %v556_v47 = vld [vmem:[%s1624_s24 + $0x6a8] sm:$0xff]  ;;  %v555_v50 = vld [vmem:[%s1624_s24 + $0x6a0] sm:$0xff]  ;;  %743 = vmatpush2.msra.mxu1 %v559_v45  ;;  %673 = vmatprep.subr.mxu0 %v428_v46  ;;  %v393_v27 = vld [vmem:[%s1624_s24 + $0x190] sm:$0xff] }
  0xa1   : > { %v424_v51 = vld [vmem:[%s1624_s24 + $0x288] sm:$0xff]  ;;  %744 = vmatprep.subr.mxu1 %v556_v47  ;;  %v423_v54 = vld [vmem:[%s1624_s24 + $0x280] sm:$0xff]  ;;  %674 = vmatpush2.msra.mxu0 %v427_v49  ;;  %v521_v28 = vld [vmem:[%s1624_s24 + $0x590] sm:$0xff] }
  0xa2   : > { %v552_v52 = vld [vmem:[%s1624_s24 + $0x688] sm:$0xff]  ;;  %v551_v55 = vld [vmem:[%s1624_s24 + $0x680] sm:$0xff]  ;;  %745 = vmatpush2.msra.mxu1 %v555_v50  ;;  %675 = vmatprep.subr.mxu0 %v424_v51  ;;  %v390_v29 = vld [vmem:[%s1624_s24 + $0x178] sm:$0xff] }
  0xa3   : > { %v420_v57 = vld [vmem:[%s1624_s24 + $0x268] sm:$0xff]  ;;  %746 = vmatprep.subr.mxu1 %v552_v52  ;;  %v419_v59 = vld [vmem:[%s1624_s24 + $0x260] sm:$0xff]  ;;  %676 = vmatpush2.msra.mxu0 %v423_v54  ;;  %v518_v30 = vld [vmem:[%s1624_s24 + $0x578] sm:$0xff] }
  0xa4   : > { %v548_v58 = vld [vmem:[%s1624_s24 + $0x668] sm:$0xff]  ;;  %v547_v60 = vld [vmem:[%s1624_s24 + $0x660] sm:$0xff]  ;;  %747 = vmatpush2.msra.mxu1 %v551_v55  ;;  %677 = vmatprep.subr.mxu0 %v420_v57  ;;  %v514_v34 = vld [vmem:[%s1624_s24 + $0x558] sm:$0xff] }
  0xa5   : > { %v416_v61 = vld [vmem:[%s1624_s24 + $0x248] sm:$0xff]  ;;  %748 = vmatprep.subr.mxu1 %v548_v58  ;;  %v415_v0 = vld [vmem:[%s1624_s24 + $0x240] sm:$0xff]  ;;  %678 = vmatpush2.msra.mxu0 %v419_v59  ;;  %v385_v35 = vld [vmem:[%s1624_s24 + $0x150] sm:$0xff] }
  0xa6   : > { %v544_v62 = vld [vmem:[%s1624_s24 + $0x648] sm:$0xff]  ;;  %v543_v1 = vld [vmem:[%s1624_s24 + $0x640] sm:$0xff]  ;;  %749 = vmatpush2.msra.mxu1 %v547_v60  ;;  %679 = vmatprep.subr.mxu0 %v416_v61  ;;  %v513_v36 = vld [vmem:[%s1624_s24 + $0x550] sm:$0xff] }
  0xa7   : > { %v412_v3 = vld [vmem:[%s1624_s24 + $0x228] sm:$0xff]  ;;  %750 = vmatprep.subr.mxu1 %v544_v62  ;;  %v411_v5 = vld [vmem:[%s1624_s24 + $0x220] sm:$0xff]  ;;  %680 = vmatpush2.msra.mxu0 %v415_v0  ;;  %v382_v37 = vld [vmem:[%s1624_s24 + $0x138] sm:$0xff] }
  0xa8   : > { %v540_v4 = vld [vmem:[%s1624_s24 + $0x628] sm:$0xff]  ;;  %v539_v6 = vld [vmem:[%s1624_s24 + $0x620] sm:$0xff]  ;;  %751 = vmatpush2.msra.mxu1 %v543_v1  ;;  %681 = vmatprep.subr.mxu0 %v412_v3  ;;  %v510_v38 = vld [vmem:[%s1624_s24 + $0x538] sm:$0xff] }
  0xa9   : > { %v408_v7 = vld [vmem:[%s1624_s24 + $0x208] sm:$0xff]  ;;  %752 = vmatprep.subr.mxu1 %v540_v4  ;;  %v407_v10 = vld [vmem:[%s1624_s24 + $0x200] sm:$0xff]  ;;  %682 = vmatpush2.msra.mxu0 %v411_v5  ;;  %v381_v39 = vld [vmem:[%s1624_s24 + $0x130] sm:$0xff] }
  0xaa   : > { %v536_v8 = vld [vmem:[%s1624_s24 + $0x608] sm:$0xff]  ;;  %753 = vmatpush2.msra.mxu1 %v539_v6  ;;  %v535_v12 = vld [vmem:[%s1624_s24 + $0x600] sm:$0xff]  ;;  %683 = vmatprep.subr.mxu0 %v408_v7  ;;  %v509_v40 = vld [vmem:[%s1624_s24 + $0x530] sm:$0xff] }
  0xab   : > { %754 = vmatprep.subr.mxu1 %v536_v8  ;;  %684 = vmatpush2.msra.mxu0 %v407_v10  ;;  %v378_v41 = vld [vmem:[%s1624_s24 + $0x118] sm:$0xff]  ;;  %v377_v44 = vld [vmem:[%s1624_s24 + $0x110] sm:$0xff] }
  0xac   : > { %685 = vmatprep.mubr.f32.mxu0 %v1779_v9  ;;  %755 = vmatpush2.msra.mxu1 %v535_v12  ;;  %v505_v45 = vld [vmem:[%s1624_s24 + $0x510] sm:$0xff]  ;;  %v374_v46 = vld [vmem:[%s1624_s24 + $0xf8] sm:$0xff] }
  0xad   : > { %756 = vmatprep.mubr.f32.mxu1 %v1784_v11  ;;  %686 = vmatmul.mubr.f32.vlgmr.msra.gmra.mxu0 %v1764_v63  ;;  %v502_v47 = vld [vmem:[%s1624_s24 + $0x4f8] sm:$0xff]  ;;  %v501_v49 = vld [vmem:[%s1624_s24 + $0x4f0] sm:$0xff] }
  0xae   : > { %757 = vmatmul.mubr.f32.vlgmr.msra.gmra.mxu1 %v1769_v2  ;;  %763 = vmatprep.subr.mxu0 %v406_v13  ;;  %v370_v50 = vld [vmem:[%s1624_s24 + $0xd8] sm:$0xff]  ;;  %v369_v52 = vld [vmem:[%s1624_s24 + $0xd0] sm:$0xff] }
  0xaf   : > { %834 = vmatprep.subr.mxu1 %v534_v14  ;;  %764 = vmatpush1.msra.mxu0 %v405_v15  ;;  %v498_v51 = vld [vmem:[%s1624_s24 + $0x4d8] sm:$0xff]  ;;  %v497_v54 = vld [vmem:[%s1624_s24 + $0x4d0] sm:$0xff] }
  0xb0   : > { %835 = vmatpush1.msra.mxu1 %v533_v16  ;;  %765 = vmatprep.subr.mxu0 %v402_v17  ;;  %v366_v55 = vld [vmem:[%s1624_s24 + $0xb8] sm:$0xff]  ;;  %v365_v57 = vld [vmem:[%s1624_s24 + $0xb0] sm:$0xff] }
  0xb1   : > { %836 = vmatprep.subr.mxu1 %v530_v18  ;;  %766 = vmatpush1.msra.mxu0 %v401_v19  ;;  %v493_v58 = vld [vmem:[%s1624_s24 + $0x4b0] sm:$0xff]  ;;  %v362_v59 = vld [vmem:[%s1624_s24 + $0x98] sm:$0xff] }
  0xb2   : > { %837 = vmatpush1.msra.mxu1 %v529_v20  ;;  %767 = vmatprep.subr.mxu0 %v398_v21  ;;  %v490_v60 = vld [vmem:[%s1624_s24 + $0x498] sm:$0xff]  ;;  %v361_v61 = vld [vmem:[%s1624_s24 + $0x90] sm:$0xff] }
  0xb3   : > { %838 = vmatprep.subr.mxu1 %v526_v22  ;;  %768 = vmatpush1.msra.mxu0 %v397_v23  ;;  %v489_v62 = vld [vmem:[%s1624_s24 + $0x490] sm:$0xff]  ;;  %v358_v0 = vld [vmem:[%s1624_s24 + $0x78] sm:$0xff] }
  0xb4   : > { %839 = vmatpush1.msra.mxu1 %v525_v24  ;;  %769 = vmatprep.subr.mxu0 %v394_v25  ;;  %v486_v1 = vld [vmem:[%s1624_s24 + $0x478] sm:$0xff]  ;;  %v357_v3 = vld [vmem:[%s1624_s24 + $0x70] sm:$0xff] }
  0xb5   : > { %840 = vmatprep.subr.mxu1 %v522_v26  ;;  %770 = vmatpush1.msra.mxu0 %v393_v27  ;;  %v485_v4 = vld [vmem:[%s1624_s24 + $0x470] sm:$0xff]  ;;  %v354_v5 = vld [vmem:[%s1624_s24 + $0x58] sm:$0xff] }
  0xb6   : > { %841 = vmatpush1.msra.mxu1 %v521_v28  ;;  %771 = vmatprep.subr.mxu0 %v390_v29  ;;  %v482_v6 = vld [vmem:[%s1624_s24 + $0x458] sm:$0xff]  ;;  %v353_v7 = vld [vmem:[%s1624_s24 + $0x50] sm:$0xff] }
  0xb7   : > { %842 = vmatprep.subr.mxu1 %v518_v30  ;;  %772 = vmatpush1.msra.mxu0 %v389_v31  ;;  %v481_v8 = vld [vmem:[%s1624_s24 + $0x450] sm:$0xff]  ;;  %v350_v10 = vld [vmem:[%s1624_s24 + $0x38] sm:$0xff] }
  0xb8   : > { %843 = vmatpush1.msra.mxu1 %v517_v32  ;;  %773 = vmatprep.subr.mxu0 %v386_v33  ;;  %v478_v12 = vld [vmem:[%s1624_s24 + $0x438] sm:$0xff]  ;;  %v349_v13 = vld [vmem:[%s1624_s24 + $0x30] sm:$0xff] }
  0xb9   : > { %844 = vmatprep.subr.mxu1 %v514_v34  ;;  %774 = vmatpush1.msra.mxu0 %v385_v35  ;;  %v477_v14 = vld [vmem:[%s1624_s24 + $0x430] sm:$0xff]  ;;  %v346_v15 = vld [vmem:[%s1624_s24 + $0x18] sm:$0xff] }
  0xba   : > { %845 = vmatpush1.msra.mxu1 %v513_v36  ;;  %775 = vmatprep.subr.mxu0 %v382_v37  ;;  %v474_v16 = vld [vmem:[%s1624_s24 + $0x418] sm:$0xff]  ;;  %v345_v17 = vld [vmem:[%s1624_s24 + $0x10] sm:$0xff] }
  0xbb   : > { %846 = vmatprep.subr.mxu1 %v510_v38  ;;  %776 = vmatpush1.msra.mxu0 %v381_v39  ;;  %v473_v18 = vld [vmem:[%s1624_s24 + $0x410] sm:$0xff]  ;;  %v470_v19 = vld [vmem:[%s1624_s24 + $0x3f8] sm:$0xff] }
  0xbc   : > { %847 = vmatpush1.msra.mxu1 %v509_v40  ;;  %777 = vmatprep.subr.mxu0 %v378_v41  ;;  %v598_v20 = vld [vmem:[%s1624_s24 + $0x7f8] sm:$0xff]  ;;  %v469_v21 = vld [vmem:[%s1624_s24 + $0x3f0] sm:$0xff] }
  0xbd   : > { %848 = vmatprep.subr.mxu1 %v506_v42  ;;  %778 = vmatpush1.msra.mxu0 %v377_v44  ;;  %v597_v22 = vld [vmem:[%s1624_s24 + $0x7f0] sm:$0xff]  ;;  %v466_v23 = vld [vmem:[%s1624_s24 + $0x3d8] sm:$0xff] }
  0xbe   : > { %849 = vmatpush1.msra.mxu1 %v505_v45  ;;  %779 = vmatprep.subr.mxu0 %v374_v46  ;;  %v594_v24 = vld [vmem:[%s1624_s24 + $0x7d8] sm:$0xff]  ;;  %v465_v25 = vld [vmem:[%s1624_s24 + $0x3d0] sm:$0xff] }
  0xbf   : > { %850 = vmatprep.subr.mxu1 %v502_v47  ;;  %780 = vmatpush1.msra.mxu0 %v373_v48  ;;  %v593_v26 = vld [vmem:[%s1624_s24 + $0x7d0] sm:$0xff]  ;;  %v462_v27 = vld [vmem:[%s1624_s24 + $0x3b8] sm:$0xff] }
  0xc0   : > { %851 = vmatpush1.msra.mxu1 %v501_v49  ;;  %781 = vmatprep.subr.mxu0 %v370_v50  ;;  %v590_v28 = vld [vmem:[%s1624_s24 + $0x7b8] sm:$0xff]  ;;  %v461_v29 = vld [vmem:[%s1624_s24 + $0x3b0] sm:$0xff] }
  0xc1   : > { %852 = vmatprep.subr.mxu1 %v498_v51  ;;  %782 = vmatpush1.msra.mxu0 %v369_v52  ;;  %v589_v30 = vld [vmem:[%s1624_s24 + $0x7b0] sm:$0xff]  ;;  %v458_v31 = vld [vmem:[%s1624_s24 + $0x398] sm:$0xff] }
  0xc2   : > { %853 = vmatpush1.msra.mxu1 %v497_v54  ;;  %783 = vmatprep.subr.mxu0 %v366_v55  ;;  %v586_v32 = vld [vmem:[%s1624_s24 + $0x798] sm:$0xff]  ;;  %v457_v33 = vld [vmem:[%s1624_s24 + $0x390] sm:$0xff] }
  0xc3   : > { %854 = vmatprep.subr.mxu1 %v494_v56  ;;  %784 = vmatpush1.msra.mxu0 %v365_v57  ;;  %v585_v34 = vld [vmem:[%s1624_s24 + $0x790] sm:$0xff]  ;;  %v454_v35 = vld [vmem:[%s1624_s24 + $0x378] sm:$0xff] }
  0xc4   : > { %855 = vmatpush1.msra.mxu1 %v493_v58  ;;  %785 = vmatprep.subr.mxu0 %v362_v59  ;;  %v582_v36 = vld [vmem:[%s1624_s24 + $0x778] sm:$0xff]  ;;  %v453_v37 = vld [vmem:[%s1624_s24 + $0x370] sm:$0xff] }
  0xc5   : > { %856 = vmatprep.subr.mxu1 %v490_v60  ;;  %786 = vmatpush1.msra.mxu0 %v361_v61  ;;  %v581_v38 = vld [vmem:[%s1624_s24 + $0x770] sm:$0xff]  ;;  %v450_v39 = vld [vmem:[%s1624_s24 + $0x358] sm:$0xff] }
  0xc6   : > { %857 = vmatpush1.msra.mxu1 %v489_v62  ;;  %787 = vmatprep.subr.mxu0 %v358_v0  ;;  %v578_v40 = vld [vmem:[%s1624_s24 + $0x758] sm:$0xff]  ;;  %v449_v41 = vld [vmem:[%s1624_s24 + $0x350] sm:$0xff] }
  0xc7   : > { %858 = vmatprep.subr.mxu1 %v486_v1  ;;  %788 = vmatpush1.msra.mxu0 %v357_v3  ;;  %v577_v42 = vld [vmem:[%s1624_s24 + $0x750] sm:$0xff]  ;;  %v446_v44 = vld [vmem:[%s1624_s24 + $0x338] sm:$0xff] }
  0xc8   : > { %859 = vmatpush1.msra.mxu1 %v485_v4  ;;  %789 = vmatprep.subr.mxu0 %v354_v5  ;;  %v574_v45 = vld [vmem:[%s1624_s24 + $0x738] sm:$0xff]  ;;  %v445_v46 = vld [vmem:[%s1624_s24 + $0x330] sm:$0xff] }
  0xc9   : > { %860 = vmatprep.subr.mxu1 %v482_v6  ;;  %790 = vmatpush1.msra.mxu0 %v353_v7  ;;  %v573_v47 = vld [vmem:[%s1624_s24 + $0x730] sm:$0xff]  ;;  %v442_v48 = vld [vmem:[%s1624_s24 + $0x318] sm:$0xff] }
  0xca   : > { %861 = vmatpush1.msra.mxu1 %v481_v8  ;;  %791 = vmatprep.subr.mxu0 %v350_v10  ;;  %v570_v49 = vld [vmem:[%s1624_s24 + $0x718] sm:$0xff]  ;;  %v441_v50 = vld [vmem:[%s1624_s24 + $0x310] sm:$0xff] }
  0xcb   : > { %862 = vmatprep.subr.mxu1 %v478_v12  ;;  %792 = vmatpush1.msra.mxu0 %v349_v13  ;;  %v569_v51 = vld [vmem:[%s1624_s24 + $0x710] sm:$0xff]  ;;  %v438_v52 = vld [vmem:[%s1624_s24 + $0x2f8] sm:$0xff] }
  0xcc   : > { %863 = vmatpush1.msra.mxu1 %v477_v14  ;;  %793 = vmatprep.subr.mxu0 %v346_v15  ;;  %v566_v54 = vld [vmem:[%s1624_s24 + $0x6f8] sm:$0xff]  ;;  %v437_v55 = vld [vmem:[%s1624_s24 + $0x2f0] sm:$0xff] }
  0xcd   : > { %864 = vmatprep.subr.mxu1 %v474_v16  ;;  %794 = vmatpush1.msra.mxu0 %v345_v17  ;;  %v565_v56 = vld [vmem:[%s1624_s24 + $0x6f0] sm:$0xff]  ;;  %v434_v57 = vld [vmem:[%s1624_s24 + $0x2d8] sm:$0xff] }
  0xce   : > { %865 = vmatpush1.msra.mxu1 %v473_v18  ;;  %795 = vmatprep.subr.mxu0 %v470_v19  ;;  %v562_v58 = vld [vmem:[%s1624_s24 + $0x6d8] sm:$0xff]  ;;  %v433_v59 = vld [vmem:[%s1624_s24 + $0x2d0] sm:$0xff] }
  0xcf   : > { %866 = vmatprep.subr.mxu1 %v598_v20  ;;  %796 = vmatpush2.msra.mxu0 %v469_v21  ;;  %v561_v60 = vld [vmem:[%s1624_s24 + $0x6d0] sm:$0xff]  ;;  %v430_v61 = vld [vmem:[%s1624_s24 + $0x2b8] sm:$0xff] }
  0xd0   : > { %867 = vmatpush2.msra.mxu1 %v597_v22  ;;  %797 = vmatprep.subr.mxu0 %v466_v23  ;;  %v558_v62 = vld [vmem:[%s1624_s24 + $0x6b8] sm:$0xff]  ;;  %v429_v0 = vld [vmem:[%s1624_s24 + $0x2b0] sm:$0xff] }
  0xd1   : > { %868 = vmatprep.subr.mxu1 %v594_v24  ;;  %798 = vmatpush2.msra.mxu0 %v465_v25  ;;  %v557_v1 = vld [vmem:[%s1624_s24 + $0x6b0] sm:$0xff]  ;;  %v426_v3 = vld [vmem:[%s1624_s24 + $0x298] sm:$0xff] }
  0xd2   : > { %869 = vmatpush2.msra.mxu1 %v593_v26  ;;  %799 = vmatprep.subr.mxu0 %v462_v27  ;;  %v554_v4 = vld [vmem:[%s1624_s24 + $0x698] sm:$0xff]  ;;  %v425_v5 = vld [vmem:[%s1624_s24 + $0x290] sm:$0xff] }
  0xd3   : > { %870 = vmatprep.subr.mxu1 %v590_v28  ;;  %800 = vmatpush2.msra.mxu0 %v461_v29  ;;  %v553_v6 = vld [vmem:[%s1624_s24 + $0x690] sm:$0xff]  ;;  %v422_v7 = vld [vmem:[%s1624_s24 + $0x278] sm:$0xff] }
  0xd4   : > { %871 = vmatpush2.msra.mxu1 %v589_v30  ;;  %801 = vmatprep.subr.mxu0 %v458_v31  ;;  %v550_v8 = vld [vmem:[%s1624_s24 + $0x678] sm:$0xff]  ;;  %v421_v10 = vld [vmem:[%s1624_s24 + $0x270] sm:$0xff] }
  0xd5   : > { %872 = vmatprep.subr.mxu1 %v586_v32  ;;  %802 = vmatpush2.msra.mxu0 %v457_v33  ;;  %v549_v12 = vld [vmem:[%s1624_s24 + $0x670] sm:$0xff]  ;;  %v418_v13 = vld [vmem:[%s1624_s24 + $0x258] sm:$0xff] }
  0xd6   : > { %873 = vmatpush2.msra.mxu1 %v585_v34  ;;  %803 = vmatprep.subr.mxu0 %v454_v35  ;;  %v546_v14 = vld [vmem:[%s1624_s24 + $0x658] sm:$0xff]  ;;  %v417_v15 = vld [vmem:[%s1624_s24 + $0x250] sm:$0xff] }
  0xd7   : > { %874 = vmatprep.subr.mxu1 %v582_v36  ;;  %804 = vmatpush2.msra.mxu0 %v453_v37  ;;  %v545_v16 = vld [vmem:[%s1624_s24 + $0x650] sm:$0xff]  ;;  %v414_v17 = vld [vmem:[%s1624_s24 + $0x238] sm:$0xff] }
  0xd8   : > { %875 = vmatpush2.msra.mxu1 %v581_v38  ;;  %805 = vmatprep.subr.mxu0 %v450_v39  ;;  %v542_v18 = vld [vmem:[%s1624_s24 + $0x638] sm:$0xff]  ;;  %v413_v19 = vld [vmem:[%s1624_s24 + $0x230] sm:$0xff]  ;;  %v341_v38 = vld [vmem:[#allocation2] sm:$0xff] }
  0xd9   : > { %876 = vmatprep.subr.mxu1 %v578_v40  ;;  %806 = vmatpush2.msra.mxu0 %v449_v41  ;;  %v541_v20 = vld [vmem:[%s1624_s24 + $0x630] sm:$0xff]  ;;  %v410_v21 = vld [vmem:[%s1624_s24 + $0x218] sm:$0xff] }
  0xda   : > { %877 = vmatpush2.msra.mxu1 %v577_v42  ;;  %807 = vmatprep.subr.mxu0 %v446_v44  ;;  %v538_v22 = vld [vmem:[%s1624_s24 + $0x618] sm:$0xff]  ;;  %v409_v23 = vld [vmem:[%s1624_s24 + $0x210] sm:$0xff] }
  0xdb   : > { %878 = vmatprep.subr.mxu1 %v574_v45  ;;  %808 = vmatpush2.msra.mxu0 %v445_v46  ;;  %v537_v24 = vld [vmem:[%s1624_s24 + $0x610] sm:$0xff] }
  0xdc   : > { %879 = vmatpush2.msra.mxu1 %v573_v47  ;;  %809 = vmatprep.subr.mxu0 %v442_v48 }
  0xdd   : > { %880 = vmatprep.subr.mxu1 %v570_v49  ;;  %810 = vmatpush2.msra.mxu0 %v441_v50 }
  0xde   : > { %881 = vmatpush2.msra.mxu1 %v569_v51  ;;  %811 = vmatprep.subr.mxu0 %v438_v52 }
  0xdf   : > { %882 = vmatprep.subr.mxu1 %v566_v54  ;;  %812 = vmatpush2.msra.mxu0 %v437_v55 }
  0xe0   : > { %883 = vmatpush2.msra.mxu1 %v565_v56  ;;  %813 = vmatprep.subr.mxu0 %v434_v57 }
  0xe1   : > { %884 = vmatprep.subr.mxu1 %v562_v58  ;;  %814 = vmatpush2.msra.mxu0 %v433_v59 }
  0xe2   : > { %885 = vmatpush2.msra.mxu1 %v561_v60  ;;  %815 = vmatprep.subr.mxu0 %v430_v61 }
  0xe3   : > { %886 = vmatprep.subr.mxu1 %v558_v62  ;;  %816 = vmatpush2.msra.mxu0 %v429_v0 }
  0xe4   : > { %887 = vmatpush2.msra.mxu1 %v557_v1  ;;  %817 = vmatprep.subr.mxu0 %v426_v3 }
  0xe5   : > { %888 = vmatprep.subr.mxu1 %v554_v4  ;;  %818 = vmatpush2.msra.mxu0 %v425_v5 }
  0xe6   : > { %889 = vmatpush2.msra.mxu1 %v553_v6  ;;  %819 = vmatprep.subr.mxu0 %v422_v7 }
  0xe7   : > { %890 = vmatprep.subr.mxu1 %v550_v8  ;;  %820 = vmatpush2.msra.mxu0 %v421_v10 }
  0xe8   : > { %891 = vmatpush2.msra.mxu1 %v549_v12  ;;  %821 = vmatprep.subr.mxu0 %v418_v13 }
  0xe9   : > { %892 = vmatprep.subr.mxu1 %v546_v14  ;;  %822 = vmatpush2.msra.mxu0 %v417_v15 }
  0xea   : > { %893 = vmatpush2.msra.mxu1 %v545_v16  ;;  %823 = vmatprep.subr.mxu0 %v414_v17 }
  0xeb   : > { %894 = vmatprep.subr.mxu1 %v542_v18  ;;  %824 = vmatpush2.msra.mxu0 %v413_v19 }
  0xec   : > { %895 = vmatpush2.msra.mxu1 %v541_v20  ;;  %825 = vmatprep.subr.mxu0 %v410_v21 }
  0xed   : > { %896 = vmatprep.subr.mxu1 %v538_v22  ;;  %826 = vmatpush2.msra.mxu0 %v409_v23 }
  0xee   : > { %827 = vmatprep.mubr.f32.mxu0 %v1779_v9  ;;  %897 = vmatpush2.msra.mxu1 %v537_v24 }
  0xef   : > { %898 = vmatprep.mubr.f32.mxu1 %v1784_v11  ;;  %828 = vmatmul.mubr.f32.vlgmr.msra.gmra.mxu0 %v1764_v63 }
  0xf0   : > { %899 = vmatmul.mubr.f32.vlgmr.msra.gmra.mxu1 %v1769_v2 }
 0x16d   : > { %v687_v25 = vpop.f32.mrf.mxu0 }
 0x16e   : > { %v758_v26 = vpop.f32.mrf.mxu1 }
 0x16f   : > { %v689_v27 = vpop.f32.mrf.mxu0  ;;  %v759_v29 = vadd.f32 %v758_v26, %v687_v25 }
 0x170   : > { %v760_v28 = vpop.f32.mrf.mxu1 }
 0x171   : > { %v761_v30 = vadd.f32 %v760_v28, %v689_v27 }
 0x173   : > { %v909_v35 = vcombine.low %v759_v29, %v761_v30 }
 0x175   : > { %v917_v11 = vrot.slane %v909_v35, %v1753_v53 }
 0x1af   : > { %v829_v31 = vpop.f32.mrf.mxu0 }
 0x1b0   : > { %v900_v32 = vpop.f32.mrf.mxu1 }
 0x1b1   : > { %v831_v33 = vpop.f32.mrf.mxu0  ;;  %v901_v36 = vadd.f32 %v900_v32, %v829_v31 }
 0x1b2   : > { %v902_v34 = vpop.f32.mrf.mxu1 }
 0x1b3   : > { %v903_v9 = vadd.f32 %v902_v34, %v831_v33 }
 0x1b5   : > { %v910_v37 = vcombine.low %v901_v36, %v903_v9 }
 0x1b7   : > { %v924_v63 = vrot.slane %v910_v37, %v1753_v53 }
 0x1b9   : > { %v925_v2 = vcombine.low %v917_v11, %v924_v63  ;;  %932 = sbr.rel (%p1195_p9) target bundleno = 611 (0x263), region = 60 }
 0x1bb   : > { %v927_v39 = vadd.f32 %v925_v2, %v341_v38 }
 0x1bd   : > { %928 = vst [vmem:[#allocation2] sm:$0xff] %v927_v39 }
 0x1be   : > { %v934_v40 = vld [vmem:[#allocation7] sm:$0xf]  ;;  %v938_v41 = vsub.s32 0, %v1741_v43  ;;  %v942_v42 = vsub.s32 1, %v1741_v43  ;;  %v946_v44 = vsub.s32 2, %v1741_v43  ;;  %v950_v45 = vsub.s32 3, %v1741_v43 }
 0x1bf   : > { %v971_v46 = vld [vmem:[#allocation8] sm:$0xf]  ;;  %vm1030_vm0 = vcmask 1041408   ;;  %vm1040_vm1 = vcmask 1024  }
 0x1c0   : > { %v939_v47 = vrot.slane %v934_v40, %v938_v41  ;;  %v943_v48 = vrot.slane %v934_v40, %v942_v42  ;;  %v947_v49 = vrot.slane %v934_v40, %v946_v44  ;;  %v976_v50 = vrot.slane %v971_v46, %v938_v41 }
 0x1c1   : > { %v951_v51 = vrot.slane %v934_v40, %v950_v45  ;;  %v980_v52 = vrot.slane %v971_v46, %v942_v42  ;;  %v984_v54 = vrot.slane %v971_v46, %v946_v44  ;;  %v988_v55 = vrot.slane %v971_v46, %v950_v45 }
 0x1c2   : > { %v952_v56 = vcombine.low %v939_v47, %v943_v48 }
 0x1c3   : > { %v953_v57 = vcombine.low %v947_v49, %v951_v51  ;;  %v989_v58 = vcombine.low %v976_v50, %v980_v52  ;;  %v990_v59 = vcombine.low %v984_v54, %v988_v55 }
 0x1c4   : > { %v960_v60 = vrot.slane %v952_v56, %v1753_v53  ;;  %v933_v0 = vld [vmem:[#allocation2] sm:$0xff] }
 0x1c5   : > { %v967_v61 = vrot.slane %v953_v57, %v1753_v53  ;;  %v997_v62 = vrot.slane %v989_v58, %v1753_v53  ;;  %v1004_v43 = vrot.slane %v990_v59, %v1753_v53 }
 0x1c7   : > { %v968_v1 = vcombine.low %v960_v60, %v967_v61  ;;  %v1005_v3 = vcombine.low %v997_v62, %v1004_v43 }
 0x1c9   : > { %v970_v4 = vadd.f32 %v968_v1, %v933_v0 }
 0x1cb   : > { %v1007_v5 = vmul.f32 %v1005_v3, %v970_v4 }
 0x1cd   : > { %v1009_v6 = vcombine.high %v1007_v5, %v1007_v5  ;;  %v1016_v7 = vrot.slane %v1007_v5, %v1753_v53 }
 0x1cf   : > { %v1023_v8 = vrot.slane %v1009_v6, %v1753_v53  ;;  %v1024_v10 = vcombine.high %v1016_v7, %v1016_v7  ;;  %v1031_v12 = vsel %vm1030_vm0, %v1016_v7, 0.0 }
 0x1d1   : > { %v1025_v13 = vcombine.high %v1023_v8, %v1023_v8  ;;  %v1032_v14 = vsel %vm1030_vm0, %v1024_v10, 0.0  ;;  %v1034_v15 = vsel %vm1030_vm0, %v1023_v8, 0.0 }
 0x1d2   : > { %v1033_v16 = vadd.f32 %v1032_v14, %v1031_v12 }
 0x1d3   : > { %v1036_v17 = vsel %vm1030_vm0, %v1025_v13, 0.0 }
 0x1d4   : > { %v1035_v18 = vadd.f32 %v1034_v15, %v1033_v16 }
 0x1d6   : > { %v1037_v19 = vadd.f32 %v1036_v17, %v1035_v18 }
 0x1d8   : > { %1038 = vadd.xlane.f32.xlu0 %v1037_v19 }
 0x261   : > { %v1039_v20 = vpop.xlane.xlu0 %1038 }
 0x262   : > { %1041 = vst.msk [vmem:[%s1961_s4] sm:$0x3] %vm1040_vm1, %v1039_v20 }
 0x263 PF: > { %s21_s20 = sadd.s32 1, %s1458_s20   ;;  %s1978_s15 = smov %s1442_s16 }
 0x264   : > { %p18_p10 = scmp.ge.s32.totalorder %s21_s20, 6   ;;  %s1979_s16 = smov %s1446_s17 }
 0x265   : > { %s1980_s17 = smov %s1583_s25  ;;  %s1981_s18 = smov %s1454_s19 }
 0x266   : > { %s1982_s19 = smov %s1984_s10  ;;  %20 = sbr.rel (!%p18_p10) target bundleno = 9 (0x9), region = 107 }
 0x26b   :  { %1067 = vsyncpa [#allocation4], 1 }
 0x26c   :  { %1069 = vsyncpa [#allocation4 + $0x1], 1 }
 0x26d   :  { %1070 = vsyncpa [#allocation6], 1 }
 0x26e   :  { %1072 = vsyncpa [#allocation6 + $0x1], 1 }
 0x26f   :  { %1073 = vsyncpa [#allocation9], 1 }

</bundles_post_ra>
